<compile_context>
chip_gen: v5e
topology: v5e:2x2
jax: 0.10.0
libtpu: 0.0.40
codegen_flags: <defaults>
</compile_context>

<pallas_src>
import math

import jax
import jax.numpy as jnp
from jax import lax
from jax.experimental import pallas as pl
from jax.experimental.pallas import tpu as pltpu


def _round_up(x: int, m: int) -> int:
    return ((x + m - 1) // m) * m


# ---------------------------------------------------------------------------
# Fused kernel: (BN-folded) Linear -> tanh -> Linear (transposed output)
# ---------------------------------------------------------------------------

def _global_predictor_kernel(x_ref, w1_ref, b1_ref, w2t_ref, b2t_ref, o_ref):
    # fc1 (BatchNorm already folded into w1/b1) -> tanh.
    # MXU matmul in the weights' dtype (bf16 by default), f32 accumulation.
    # Dropout is identity in eval mode.
    x = x_ref[...].astype(w1_ref.dtype)                          # (TB, D)
    h = jnp.tanh(
        jnp.dot(x, w1_ref[...], preferred_element_type=jnp.float32)
        + b1_ref[...])                                           # (TB, Dh) f32

    # fc2, transposed: (Dout_p, Dh) x (TB, Dh)^T -> (Dout_p, TB).
    # Batch rides the lane axis so tiny d_out is not padded to 128 lanes.
    out_t = lax.dot_general(
        w2t_ref[...], h.astype(w2t_ref.dtype),
        dimension_numbers=(((1,), (1,)), ((), ())),
        preferred_element_type=jnp.float32) + b2t_ref[...]       # (Dout_p, TB)
    o_ref[...] = out_t.astype(o_ref.dtype)


# ---------------------------------------------------------------------------
# One-time parameter preparation (NOT per call): BN fold + fc2 transpose/pad
# ---------------------------------------------------------------------------

def prepare_params(raw, *, matmul_dtype=jnp.bfloat16):
    """Fold BatchNorm1d(eval) into fc1 and pre-transpose/pad fc2."""
    d, dh = raw["fc1_w"].shape
    dout = raw["fc2_w"].shape[1]
    eps = 1e-5                                   # PyTorch BatchNorm1d default

    # BatchNorm1d in eval mode == per-feature affine; fold into fc1 in f32.
    scale = raw["bn_g"] * lax.rsqrt(raw["bn_rv"] + eps)          # (1, d)
    shift = raw["bn_b"] - raw["bn_rm"] * scale                   # (1, d)
    w1f = raw["fc1_w"] * scale.reshape(d, 1)                     # (d, dh)
    b1f = shift @ raw["fc1_w"] + raw["fc1_b"]                    # (1, dh)

    # fc2 pre-transposed, output rows padded to a sublane multiple of 8.
    dout_p = _round_up(dout, 8)
    w2t = jnp.zeros((dout_p, dh), jnp.float32).at[:dout].set(raw["fc2_w"].T)
    b2t = jnp.zeros((dout_p, 1), jnp.float32).at[:dout, 0].set(
        raw["fc2_b"].reshape(-1))

    return {
        "fc1_w": w1f.astype(matmul_dtype),   # (d, dh)      BN-folded
        "fc1_b": b1f.astype(jnp.float32),    # (1, dh)      BN-folded
        "fc2_wt": w2t.astype(matmul_dtype),  # (dout_p, dh) transposed + padded
        "fc2_bt": b2t,                       # (dout_p, 1)  padded, f32
        "d_out": dout,
    }


def _pick_batch_tile(bsz: int):
    b8 = _round_up(bsz, 8)
    if b8 < 256:
        tb = b8                    # single tile; any sublane multiple is fine
    else:
        # Multi-tile: tile must be a lane multiple (128) because batch sits on
        # the lane axis of the transposed output; keep >= 2 grid steps so both
        # v7x TensorCores get work.
        tb = 512
        while b8 < 2 * tb:
            tb //= 2               # 512 -> 256 -> 128
    b_pad = _round_up(b8, tb)
    return tb, b_pad


# ---------------------------------------------------------------------------
# Wrapper
# ---------------------------------------------------------------------------

def global_predictor_forward(prep, x):
    """x: (B, d_model) -> (B, d_out).  Eval-mode GlobalPredictor forward."""
    bsz, d = x.shape
    dh = prep["fc1_w"].shape[1]
    dout_p = prep["fc2_wt"].shape[0]
    dout = prep["d_out"]

    tb, b_pad = _pick_batch_tile(bsz)
    if b_pad != bsz:
        x = jnp.pad(x, ((0, b_pad - bsz), (0, 0)))

    w_itemsize = prep["fc1_w"].dtype.itemsize
    # VMEM budget: double-buffered x / out tiles, resident weights, live h.
    est = (2 * tb * d * 4 + 2 * dout_p * tb * 4
           + 2 * (d * dh + dout_p * dh) * w_itemsize
           + 2 * (dh + dout_p) * 4
           + 2 * tb * dh * 4)
    vmem_limit = int(min(max(2 * est, 32 * 1024 * 1024), 64 * 1024 * 1024))
    # TODO(synk): add a K-axis grid + f32 accumulator scratch when
    # d_model*d_h*itemsize no longer fits VMEM-resident (v7x: 64 MiB).

    cost = pl.CostEstimate(
        flops=2 * b_pad * d * dh + 2 * b_pad * dh * dout_p,
        transcendentals=b_pad * dh,
        bytes_accessed=(b_pad * d * 4 + dout_p * b_pad * 4
                        + (d * dh + dout_p * dh) * w_itemsize
                        + (dh + dout_p) * 4))

    out_t = pl.pallas_call(
        _global_predictor_kernel,
        out_shape=jax.ShapeDtypeStruct((dout_p, b_pad), jnp.float32),
        grid_spec=pltpu.PrefetchScalarGridSpec(
            num_scalar_prefetch=0,
            grid=(b_pad // tb,),
            in_specs=[
                pl.BlockSpec((tb, d), lambda i: (i, 0)),       # x tile
                pl.BlockSpec((d, dh), lambda i: (0, 0)),       # fc1 w (folded)
                pl.BlockSpec((1, dh), lambda i: (0, 0)),       # fc1 b (folded)
                pl.BlockSpec((dout_p, dh), lambda i: (0, 0)),  # fc2 w^T (pad)
                pl.BlockSpec((dout_p, 1), lambda i: (0, 0)),   # fc2 b (pad)
            ],
            out_specs=pl.BlockSpec((dout_p, tb), lambda i: (0, i)),
        ),
        compiler_params=pltpu.CompilerParams(
            dimension_semantics=("parallel",),  # batch tiles are independent
            vmem_limit_bytes=vmem_limit),
        cost_estimate=cost,
    )(x, prep["fc1_w"], prep["fc1_b"], prep["fc2_wt"], prep["fc2_bt"])

    # (Dout_p, B_pad) -> (B, Dout)
    return out_t[:dout, :bsz].T


# ---------------------------------------------------------------------------
# Raw parameters (PyTorch-equivalent layout) + pure-JAX reference
# ---------------------------------------------------------------------------

def init_raw_params(key, *, d_model, d_h, d_out):
    keys = jax.random.split(key, 8)
    u = lambda k, shape, s: jax.random.uniform(k, shape, jnp.float32, -s, s)
    return {
        # BatchNorm1d running stats + affine (eval mode).
        "bn_rm": 0.1 * jax.random.normal(keys[0], (1, d_model), jnp.float32),
        "bn_rv": 1.0 + 0.1 * jax.random.uniform(keys[1], (1, d_model),
                                                jnp.float32),
        "bn_g": 1.0 + 0.1 * jax.random.normal(keys[2], (1, d_model),
                                              jnp.float32),
        "bn_b": 0.1 * jax.random.normal(keys[3], (1, d_model), jnp.float32),
        # fc1: Linear(d_model, d_h)   (stored (Din, Dout))
        "fc1_w": u(keys[4], (d_model, d_h), 1.0 / math.sqrt(d_model)),
        "fc1_b": u(keys[5], (1, d_h), 1.0 / math.sqrt(d_model)),
        # fc2: Linear(d_h, d_out)
        "fc2_w": u(keys[6], (d_h, d_out), 1.0 / math.sqrt(d_h)),
        "fc2_b": u(keys[7], (1, d_out), 1.0 / math.sqrt(d_h)),
    }


def reference_forward(raw, x):
    """Pure-JAX reference of GlobalPredictor.forward in eval mode (f32)."""
    xn = ((x - raw["bn_rm"]) * lax.rsqrt(raw["bn_rv"] + 1e-5)
          * raw["bn_g"] + raw["bn_b"])
    h = jnp.tanh(xn @ raw["fc1_w"] + raw["fc1_b"])
    return h @ raw["fc2_w"] + raw["fc2_b"]


if __name__ == "__main__":
    # Small shapes consistent with GlobalPredictor.forward: x is (B, d_model).
    B, D_MODEL, D_H, D_OUT = 2, 128, 128, 1

    root = jax.random.PRNGKey(0)
    kp, kx = jax.random.split(root, 2)

    raw = init_raw_params(kp, d_model=D_MODEL, d_h=D_H, d_out=D_OUT)
    x = jax.random.normal(kx, (B, D_MODEL), jnp.float32)
    ref = reference_forward(raw, x)

    # 1) f32 matmul path: numerically exact vs. reference (tight tolerance).
    prep_f32 = prepare_params(raw, matmul_dtype=jnp.float32)
    out_f32 = jax.block_until_ready(global_predictor_forward(prep_f32, x))
    assert out_f32.shape == (B, D_OUT), out_f32.shape
    assert bool(jnp.all(jnp.isfinite(out_f32)))
    assert bool(jnp.allclose(out_f32, ref, rtol=1e-4, atol=1e-4)), (
        float(jnp.max(jnp.abs(out_f32 - ref))))

    # 2) bf16 fast path (MXU-native on v5e/v6e/v7x), f32 accumulation:
    #    looser tolerance vs. the f32 reference.
    prep_bf16 = prepare_params(raw)   # default matmul_dtype=bf16
    out_bf16 = jax.block_until_ready(global_predictor_forward(prep_bf16, x))
    assert out_bf16.shape == (B, D_OUT), out_bf16.shape
    assert bool(jnp.all(jnp.isfinite(out_bf16)))
    assert bool(jnp.allclose(out_bf16, ref, rtol=3e-2, atol=3e-2)), (
        float(jnp.max(jnp.abs(out_bf16 - ref))))

    print("KERNEL_OK")
</pallas_src>

<mosaic_0001>
module attributes {stable_mosaic.version = 11 : i64} {
  func.func @_global_predictor_kernel(%arg0: i32, %arg1: memref<8x128xf32, #tpu.memory_space<vmem>>, %arg2: memref<128x128xf32, #tpu.memory_space<vmem>>, %arg3: memref<1x128xf32, #tpu.memory_space<vmem>>, %arg4: memref<8x128xf32, #tpu.memory_space<vmem>>, %arg5: memref<8x1xf32, #tpu.memory_space<vmem>>, %arg6: memref<8x8xf32, #tpu.memory_space<vmem>>) attributes {dimension_semantics = [#tpu.dimension_semantics<parallel>], iteration_bounds = array<i64: 1>, scalar_prefetch = 0 : i64, scratch_operands = 0 : i64, tpu.core_type = #tpu.core_type<tc>, window_params = [{transform_indices = @transform_0, window_bounds = array<i64: 8, 128>}, {pipeline_mode = #tpu.pipeline_mode<synchronous>, transform_indices = @transform_1, window_bounds = array<i64: 128, 128>}, {pipeline_mode = #tpu.pipeline_mode<synchronous>, transform_indices = @transform_2, window_bounds = array<i64: 1, 128>}, {pipeline_mode = #tpu.pipeline_mode<synchronous>, transform_indices = @transform_3, window_bounds = array<i64: 8, 128>}, {pipeline_mode = #tpu.pipeline_mode<synchronous>, transform_indices = @transform_4, window_bounds = array<i64: 8, 1>}, {transform_indices = @transform_5, window_bounds = array<i64: 8, 8>}]} {
    %c0 = arith.constant 0 : index
    %c0_0 = arith.constant 0 : index
    %0 = vector.load %arg1[%c0, %c0_0] : memref<8x128xf32, #tpu.memory_space<vmem>>, vector<8x128xf32>
    %c0_1 = arith.constant 0 : index
    %c0_2 = arith.constant 0 : index
    %1 = vector.load %arg2[%c0_1, %c0_2] : memref<128x128xf32, #tpu.memory_space<vmem>>, vector<128x128xf32>
    %cst = arith.constant dense<0.000000e+00> : vector<8x128xf32>
    %2 = tpu.matmul %0, %1, %cst {dimension_numbers = #tpu.dot_dimension_numbers<[1], [0], [0], [1], [0, 0, 1, 1], [], []>} : vector<8x128xf32>, vector<128x128xf32>, vector<8x128xf32> -> vector<8x128xf32>
    %c0_3 = arith.constant 0 : index
    %c0_4 = arith.constant 0 : index
    %3 = vector.load %arg3[%c0_3, %c0_4] : memref<1x128xf32, #tpu.memory_space<vmem>>, vector<1x128xf32>
    %4 = vector.broadcast %3 : vector<1x128xf32> to vector<8x128xf32>
    %5 = arith.addf %2, %4 : vector<8x128xf32>
    %6 = math.tanh %5 : vector<8x128xf32>
    %c0_5 = arith.constant 0 : index
    %c0_6 = arith.constant 0 : index
    %7 = vector.load %arg4[%c0_5, %c0_6] : memref<8x128xf32, #tpu.memory_space<vmem>>, vector<8x128xf32>
    %cst_7 = arith.constant dense<0.000000e+00> : vector<8x8xf32>
    %8 = tpu.matmul %7, %6, %cst_7 {dimension_numbers = #tpu.dot_dimension_numbers<[1], [1], [0], [0], [0, 0, 1, 0], [], []>} : vector<8x128xf32>, vector<8x128xf32>, vector<8x8xf32> -> vector<8x8xf32>
    %c0_8 = arith.constant 0 : index
    %c0_9 = arith.constant 0 : index
    %9 = vector.load %arg5[%c0_8, %c0_9] : memref<8x1xf32, #tpu.memory_space<vmem>>, vector<8x1xf32>
    %10 = vector.broadcast %9 : vector<8x1xf32> to vector<8x8xf32>
    %11 = arith.addf %8, %10 : vector<8x8xf32>
    %c0_10 = arith.constant 0 : index
    %c0_11 = arith.constant 0 : index
    %12 = vector.load %arg6[%c0_10, %c0_11] : memref<8x8xf32, #tpu.memory_space<vmem>>, vector<8x8xf32>
    tpu.vector_store %arg6[%c0_10, %c0_11], %11 {strides = array<i32>} : memref<8x8xf32, #tpu.memory_space<vmem>>, vector<8x8xf32>,
    return
  }
  func.func @transform_0(%arg0: i32) -> (i32, i32) {
    %c0_i32 = arith.constant 0 : i32
    %c0_i32_0 = arith.constant 0 : i32
    return %arg0, %c0_i32 : i32, i32
  }
  func.func @transform_1(%arg0: i32) -> (i32, i32) {
    %c0_i32 = arith.constant 0 : i32
    %c0_i32_0 = arith.constant 0 : i32
    %c0_i32_1 = arith.constant 0 : i32
    return %c0_i32, %c0_i32_0 : i32, i32
  }
  func.func @transform_2(%arg0: i32) -> (i32, i32) {
    %c0_i32 = arith.constant 0 : i32
    %c0_i32_0 = arith.constant 0 : i32
    %c0_i32_1 = arith.constant 0 : i32
    return %c0_i32, %c0_i32_0 : i32, i32
  }
  func.func @transform_3(%arg0: i32) -> (i32, i32) {
    %c0_i32 = arith.constant 0 : i32
    %c0_i32_0 = arith.constant 0 : i32
    %c0_i32_1 = arith.constant 0 : i32
    return %c0_i32, %c0_i32_0 : i32, i32
  }
  func.func @transform_4(%arg0: i32) -> (i32, i32) {
    %c0_i32 = arith.constant 0 : i32
    %c0_i32_0 = arith.constant 0 : i32
    %c0_i32_1 = arith.constant 0 : i32
    return %c0_i32, %c0_i32_0 : i32, i32
  }
  func.func @transform_5(%arg0: i32) -> (i32, i32) {
    %c0_i32 = arith.constant 0 : i32
    %c0_i32_0 = arith.constant 0 : i32
    return %c0_i32, %arg0 : i32, i32
  }
}

</mosaic_0001>

<bundles_post_ra>
// kernel: tpu_custom_call.1
= control target key start
LH: loop header
LB: loop body
LE: loop exit
PB: predicated region body
PF: predicated region fallthrough
CT: control target
= control target key end

     0   :  { %10 = vsyncpa [#allocation3], 0  ;;  %s282_s0 = inlined_call_operand.vmem [shape: f32[8,128], index: 0, kind: input, shape index: {}]   ;;  %s283_s1 = inlined_call_operand.hbm [shape: f32[128,128], index: 1, kind: input, shape index: {}]   ;;  %s284_s2 = inlined_call_operand.vmem [shape: f32[1,128], index: 2, kind: input, shape index: {}]   ;;  %s285_s3 = inlined_call_operand.hbm [shape: f32[8,128], index: 3, kind: input, shape index: {}]   ;;  %s286_s4 = inlined_call_operand.vmem [shape: f32[8,1], index: 4, kind: input, shape index: {}]   ;;  %s287_s5 = inlined_call_operand.hbm [shape: f32[8,8], index: 5, kind: output, shape index: {}]  }
   0x1   :  { %11 = vsyncpa [#allocation6], 0 }
   0x2   :  { %12 = vsyncpa [#allocation4], 0  ;;  %s19_s20 = sshll.u32 %s283_s1, 4  ;;  %s228_s21 = smov [#allocation2]   ;;  %s20_s20 = int_to_ptr.hbm [resolvable:$true] %s19_s20 }
   0x3   :  { %s21_s22 = sshll.u32 %s228_s21, 4  ;;  %s35_s25 = sshll.u32 %s285_s3, 4  ;;  %s22_s22 = int_to_ptr.vmem [resolvable:$true] %s21_s22  ;;  %s36_s25 = int_to_ptr.hbm [resolvable:$true] %s35_s25 }
   0x4   :  { %s229_s26 = smov 128   ;;  %s230_s27 = smov 8  }
   0x5   :  { %27 = dma.hbm_to_vmem [thread:$0]  %s20_s20, 2048, %s22_s22, [#allocation3], %s229_s26, %s229_s26, %s230_s27  }
   0x6   :  { %s231_s28 = smov [#allocation5]  }
   0x7   :  { %s37_s29 = sshll.u32 %s231_s28, 4  ;;  %s38_s29 = int_to_ptr.vmem [resolvable:$true] %s37_s29 }
   0x8   :  { %40 = dma.hbm_to_vmem [thread:$0]  %s36_s25, 128, %s38_s29, [#allocation6]  }
   0x9   :  { %222 = dma.done.wait [#allocation3], 2048  }
   0xa   :  { %223 = vsyncadd [#allocation3], 4294965248 }
   0xb   :  { %224 = dma.done.wait [#allocation6], 128  }
   0xc   :  { %225 = vsyncadd [#allocation6], 4294967168  ;;  %v67_v0 = vld [vmem:[#allocation2 + $0x78] sm:$0xff]  ;;  %v66_v1 = vld [vmem:[#allocation2 + $0x70] sm:$0xff]  ;;  %v232_v18 = vmov 0   ;;  %vm120_vm0 = vcmask 64512  }
   0xd   :  { %72 = vmatpush.msra.mxu0 %v67_v0  ;;  %v65_v2 = vld [vmem:[#allocation2 + $0x68] sm:$0xff]  ;;  %v64_v3 = vld [vmem:[#allocation2 + $0x60] sm:$0xff]  ;;  %v63_v4 = vld [vmem:[#allocation2 + $0x58] sm:$0xff]  ;;  %146 = vset.pattern.permute.xlu0 %v232_v18 }
   0xe   :  { %v62_v5 = vld [vmem:[#allocation2 + $0x50] sm:$0xff]  ;;  %v61_v6 = vld [vmem:[#allocation2 + $0x48] sm:$0xff]  ;;  %v60_v7 = vld [vmem:[#allocation2 + $0x40] sm:$0xff] }
   0xf   :  { %73 = vmatpush.msra.mxu0 %v66_v1  ;;  %v59_v8 = vld [vmem:[#allocation2 + $0x38] sm:$0xff]  ;;  %v58_v9 = vld [vmem:[#allocation2 + $0x30] sm:$0xff]  ;;  %v57_v10 = vld [vmem:[#allocation2 + $0x28] sm:$0xff] }
  0x10   :  { %v56_v11 = vld [vmem:[#allocation2 + $0x20] sm:$0xff]  ;;  %v55_v12 = vld [vmem:[#allocation2 + $0x18] sm:$0xff]  ;;  %v54_v13 = vld [vmem:[#allocation2 + $0x10] sm:$0xff] }
  0x11   :  { %74 = vmatpush.msra.mxu0 %v65_v2  ;;  %v53_v14 = vld [vmem:[#allocation2 + $0x8] sm:$0xff]  ;;  %v52_v15 = vld [vmem:[#allocation2] sm:$0xff] }
  0x12   :  { %v51_v16 = vld [vmem:[%s282_s0] sm:$0xff]  ;;  %s233_s0 = smov [#allocation7]  }
  0x13   :  { %75 = vmatpush.msra.mxu0 %v64_v3  ;;  %v94_v17 = vld [vmem:[%s286_s4] sm:$0xff]  ;;  %s127_s9 = sshll.u32 %s233_s0, 4  ;;  %s129_s4 = sshll.u32 %s287_s5, 4  ;;  %s128_s9 = int_to_ptr.vmem [resolvable:$true] %s127_s9  ;;  %s130_s4 = int_to_ptr.hbm [resolvable:$true] %s129_s4 }
  0x14   :  { %97 = vperm.xlu0 %146, %v94_v17   ;;  %v147_v19 = vld [vmem:[%s284_s2] ss:$0 sm:$0xff] }
  0x15   :  { %76 = vmatpush.msra.mxu0 %v63_v4  ;;  %v93_v23 = vld [vmem:[#allocation5] sm:$0xff] }
  0x17   :  { %77 = vmatpush.msra.mxu0 %v62_v5 }
  0x19   :  { %78 = vmatpush.msra.mxu0 %v61_v6 }
  0x1b   :  { %79 = vmatpush.msra.mxu0 %v60_v7 }
  0x1d   :  { %80 = vmatpush.msra.mxu0 %v59_v8 }
  0x1f   :  { %81 = vmatpush.msra.mxu0 %v58_v9 }
  0x21   :  { %82 = vmatpush.msra.mxu0 %v57_v10 }
  0x23   :  { %83 = vmatpush.msra.mxu0 %v56_v11 }
  0x25   :  { %84 = vmatpush.msra.mxu0 %v55_v12 }
  0x27   :  { %85 = vmatpush.msra.mxu0 %v54_v13 }
  0x29   :  { %86 = vmatpush.msra.mxu0 %v53_v14 }
  0x2b   :  { %87 = vmatpush.msra.mxu0 %v52_v15 }
  0x2c   :  { %88 = vmatmul.f32.vlgmr.msra.gmra.mxu0 %v51_v16 }
  0x86   :  { %v98_v24 = vpop.permute.xlu0 %97 }
  0xa9   :  { %v89_v20 = vpop.f32.mrf.mxu0 }
  0xaa   :  { %v90_v21 = vadd.f32 %v147_v19, %v89_v20 }
  0xac   :  { %148 = vtanh.f32 %v90_v21 }
  0xb2   :  { %v149_v22 = vpop.eup %148 }
  0xb3   :  { %115 = vmatpush.xpose.msra.mxu1 %v149_v22 }
  0xb6   :  { %116 = vmatmul.f32.vlgmr.msra.gmra.mxu1 %v93_v23 }
 0x133   :  { %v117_v25 = vpop.f32.mrf.mxu1 }
 0x134   :  { %v118_v26 = vadd.f32 %v117_v25, %v98_v24 }
 0x136   :  { %121 = vst.msk [vmem:[#allocation7] sm:$0xff] %vm120_vm0, %v118_v26 }
 0x137   :  { %132 = dma.vmem_to_hbm [thread:$0]  %s128_s9, 128, %s130_s4, [#allocation4]  }
 0x138   :  { %226 = dma.done.wait [#allocation4], 128  }
 0x139   :  { %227 = vsyncadd [#allocation4], 4294967168 }
 0x13a   :  { %137 = vsyncpa [#allocation3], 1 }
 0x13b   :  { %138 = vsyncpa [#allocation6], 1 }
 0x13c   :  { %139 = vsyncpa [#allocation4], 1 }

</bundles_post_ra>
